<compile_context>
chip_gen: v7x
topology: tpu7x:2x2x1
jax: 0.10.0
libtpu: 0.0.40
codegen_flags: <defaults>
</compile_context>

<pallas_src>
import math
from functools import partial

import jax
import jax.numpy as jnp
from jax import lax
from jax.experimental import pallas as pl
from jax.experimental.pallas import tpu as pltpu


def _round_up(x, m):
    return (x + m - 1) // m * m


# ----------------------------------------------------------------------------
# Kernel: one trans-A im2col-conv matmul tile + ReLU + in-kernel-mask segment
# sum per step; mean-pool scale + fc projection + output writes on final step.
# ----------------------------------------------------------------------------
def encoder_kernel(patch_ref, wconv_ref, fcw_ref, fcb_ref,
                   feat_ref, rep_ref, rep_acc, *, inv_hw, rows_per_img):
    # patch_ref: [K_pad, TM]      bf16   (im2col columns; K on sublane axis)
    # wconv_ref: [K_pad, Cf_pad]  bf16
    # fcw_ref:   [Cf_pad, E_pad]  bf16
    # fcb_ref:   [1, E_pad]       f32
    # feat_ref:  [B_pad, E_pad]   f32
    # rep_ref:   [B_pad, Cf_pad]  f32
    # rep_acc:   [B_pad, Cf_pad]  f32 scratch (pooled-sum accumulator)
    k = pl.program_id(0)
    tm = patch_ref.shape[1]
    b_pad = rep_acc.shape[0]

    @pl.when(k == 0)
    def _():
        rep_acc[...] = jnp.zeros_like(rep_acc)

    # Conv stem as one MXU matmul contracting the sublane K axis of both
    # operands (trans-A form), bf16 x bf16 -> f32 accumulation, then ReLU.
    conv = lax.dot_general(patch_ref[...], wconv_ref[...],
                           dimension_numbers=(((0,), (0,)), ((), ())),
                           preferred_element_type=jnp.float32)    # [TM, Cf_pad]
    conv = jnp.maximum(conv, 0.0)

    # Global-average-pool numerator: per-image segment sums.  The 0/1 mask is
    # generated in-kernel (no HBM stream); accumulation stays in f32.  Padded
    # rows (zero patches) contribute zeros, padded batch rows are sliced off
    # in the wrapper.
    b_ids = lax.broadcasted_iota(jnp.int32, (b_pad, tm), 0)
    r_ids = lax.broadcasted_iota(jnp.int32, (b_pad, tm), 1) + k * tm
    lo = b_ids * rows_per_img
    mask = jnp.logical_and(r_ids >= lo, r_ids < lo + rows_per_img)
    rep_acc[...] += jnp.dot(mask.astype(jnp.float32), conv,
                            preferred_element_type=jnp.float32)   # [B_pad, Cf_pad]

    @pl.when(k == pl.num_programs(0) - 1)
    def _():
        rep = rep_acc[...] * inv_hw                               # mean pool (f32)
        rep_ref[...] = rep
        # Replaced fc layer: features = rep @ W^T + b.
        feat = jnp.dot(rep.astype(jnp.bfloat16), fcw_ref[...],
                       preferred_element_type=jnp.float32) + fcb_ref[...]
        feat_ref[...] = feat


def encoder_cnn_forward(images_nchw, w_conv, fc_w_t, fc_b, *,
                        need_rep=False, tm=512):
    """images_nchw: [B, Cin, H, W] float32 (PyTorch layout)."""
    B, Cin, H, W = images_nchw.shape
    KH, KW, _, Cf = w_conv.shape
    E = fc_w_t.shape[1]
    Ho, Wo = H - KH + 1, W - KW + 1
    S = Ho * Wo                       # rows (output pixels) per image
    M = B * S
    K = KH * KW * Cin
    assert tm % 128 == 0

    K_pad = _round_up(K, 32)          # K lives on the sublane axis (bf16 granule)
    Cf_pad = _round_up(Cf, 128)
    E_pad = _round_up(E, 128)
    B_pad = _round_up(B, 8)
    M_pad = _round_up(M, tm)
    n_m = M_pad // tm

    # ---- wrapper-side layout prep: transposed lane-dense im2col, built and
    # padded in a single pass (no zeros+scatter double materialization).
    x = jnp.transpose(images_nchw, (0, 2, 3, 1))                  # NCHW -> NHWC
    taps = jnp.stack([x[:, kh:kh + Ho, kw:kw + Wo, :]
                      for kh in range(KH) for kw in range(KW)],
                     axis=0)                                       # [KH*KW,B,Ho,Wo,Cin]
    patches_t = jnp.transpose(taps, (0, 4, 1, 2, 3)).reshape(K, M)  # K=(kh,kw,cin)
    patches_t = jnp.pad(patches_t.astype(jnp.bfloat16),
                        ((0, K_pad - K), (0, M_pad - M)))          # [K_pad, M_pad]

    wconv_p = jnp.pad(w_conv.reshape(K, Cf).astype(jnp.bfloat16),
                      ((0, K_pad - K), (0, Cf_pad - Cf)))
    fcw_p = jnp.pad(fc_w_t.astype(jnp.bfloat16),
                    ((0, Cf_pad - Cf), (0, E_pad - E)))
    fcb_p = jnp.pad(fc_b.reshape(1, -1).astype(jnp.float32),
                    ((0, 0), (0, E_pad - E)))

    feat_full, rep_full = pl.pallas_call(
        partial(encoder_kernel, inv_hw=1.0 / float(S), rows_per_img=S),
        out_shape=(
            jax.ShapeDtypeStruct((B_pad, E_pad), jnp.float32),
            jax.ShapeDtypeStruct((B_pad, Cf_pad), jnp.float32),
        ),
        grid_spec=pltpu.PrefetchScalarGridSpec(
            num_scalar_prefetch=0,
            grid=(n_m,),
            in_specs=[
                pl.BlockSpec((K_pad, tm), lambda k: (0, k)),       # patch stream
                pl.BlockSpec((K_pad, Cf_pad), lambda k: (0, 0)),   # conv weights
                pl.BlockSpec((Cf_pad, E_pad), lambda k: (0, 0)),   # fc weights
                pl.BlockSpec((1, E_pad), lambda k: (0, 0)),        # fc bias
            ],
            out_specs=[
                pl.BlockSpec((B_pad, E_pad), lambda k: (0, 0)),
                pl.BlockSpec((B_pad, Cf_pad), lambda k: (0, 0)),
            ],
            scratch_shapes=[pltpu.VMEM((B_pad, Cf_pad), jnp.float32)],
        ),
        compiler_params=pltpu.CompilerParams(
            # Single row-tile axis is a reduction into the output -> arbitrary.
            dimension_semantics=("arbitrary",)),
    )(patches_t, wconv_p, fcw_p, fcb_p)

    feats = feat_full[:B, :E]
    reps = rep_full[:B, :Cf]
    if need_rep:
        # Mirrors `representations.squeeze()` in the original module.
        return feats, jnp.squeeze(reps)
    return feats


def init_params(key, cin, cf, embed_size):
    """Conv stem is synthetic; fc follows the module (xavier weight, zero bias)."""
    k_conv, k_fc = jax.random.split(key)
    w_conv = jax.random.normal(k_conv, (3, 3, cin, cf), jnp.float32) * 0.1
    bound = math.sqrt(6.0 / (cf + embed_size))
    fc_w = jax.random.uniform(k_fc, (embed_size, cf), jnp.float32,
                              minval=-bound, maxval=bound)
    fc_w_t = fc_w.T                                                # [cf, E]
    fc_b = jnp.zeros((embed_size,), jnp.float32)
    return w_conv, fc_w_t, fc_b


def reference_forward(images_nchw, w_conv, fc_w_t, fc_b):
    """Pure-JAX f32 reference (independent per-tap formulation)."""
    x = jnp.transpose(images_nchw, (0, 2, 3, 1)).astype(jnp.float32)
    B, H, W, Cin = x.shape
    KH, KW, _, Cf = w_conv.shape
    Ho, Wo = H - KH + 1, W - KW + 1
    acc = jnp.zeros((B, Ho, Wo, Cf), jnp.float32)
    for kh in range(KH):
        for kw in range(KW):
            acc = acc + jnp.einsum('bhwc,cf->bhwf',
                                   x[:, kh:kh + Ho, kw:kw + Wo, :],
                                   w_conv[kh, kw])
    acc = jnp.maximum(acc, 0.0)
    rep = acc.mean(axis=(1, 2))                                    # [B, Cf]
    feat = rep @ fc_w_t + fc_b.reshape(1, -1)
    return feat, rep


if __name__ == "__main__":
    key = jax.random.PRNGKey(0)
    k_img, k_par = jax.random.split(key)

    B, Cin, H, W = 2, 3, 16, 16        # small synthetic image batch (NCHW)
    Cf = 32                            # backbone feature channels (stand-in for 2048)
    embed_size = 32

    images = jax.random.normal(k_img, (B, Cin, H, W), jnp.float32)
    w_conv, fc_w_t, fc_b = init_params(k_par, Cin, Cf, embed_size)

    ref_feat, ref_rep = reference_forward(images, w_conv, fc_w_t, fc_b)

    # need_rep=True path with the default (large) tile: single grid step.
    feats, reps = encoder_cnn_forward(images, w_conv, fc_w_t, fc_b,
                                      need_rep=True)
    jax.block_until_ready((feats, reps))
    assert feats.shape == (B, embed_size)
    assert reps.shape == (B, Cf)
    assert jnp.all(jnp.isfinite(feats)) and jnp.all(jnp.isfinite(reps))
    assert jnp.allclose(feats, ref_feat, rtol=5e-2, atol=5e-2)
    assert jnp.allclose(reps, ref_rep, rtol=5e-2, atol=5e-2)

    # Small tile -> multi-step reduction grid (exercises accumulator
    # init / accumulate / finalize across grid steps).
    feats_m, reps_m = encoder_cnn_forward(images, w_conv, fc_w_t, fc_b,
                                          need_rep=True, tm=128)
    jax.block_until_ready((feats_m, reps_m))
    assert jnp.allclose(feats_m, ref_feat, rtol=5e-2, atol=5e-2)
    assert jnp.allclose(reps_m, ref_rep, rtol=5e-2, atol=5e-2)

    # need_rep=False path: features only.
    feats_only = encoder_cnn_forward(images, w_conv, fc_w_t, fc_b,
                                     need_rep=False)
    jax.block_until_ready(feats_only)
    assert feats_only.shape == (B, embed_size)

    print("KERNEL_OK")
</pallas_src>

<mosaic_0001>
module attributes {stable_mosaic.version = 11 : i64} {
  func.func @encoder_kernel(%arg0: i32, %arg1: memref<32x512xbf16, #tpu.memory_space<vmem>>, %arg2: memref<32x128xbf16, #tpu.memory_space<vmem>>, %arg3: memref<128x128xbf16, #tpu.memory_space<vmem>>, %arg4: memref<1x128xf32, #tpu.memory_space<vmem>>, %arg5: memref<8x128xf32, #tpu.memory_space<vmem>>, %arg6: memref<8x128xf32, #tpu.memory_space<vmem>>, %arg7: memref<8x128xf32, #tpu.memory_space<vmem>>) attributes {dimension_semantics = [#tpu.dimension_semantics<arbitrary>], iteration_bounds = array<i64: 1>, scalar_prefetch = 0 : i64, scratch_operands = 1 : i64, tpu.core_type = #tpu.core_type<tc>, window_params = [{transform_indices = @transform_0, window_bounds = array<i64: 32, 512>}, {pipeline_mode = #tpu.pipeline_mode<synchronous>, transform_indices = @transform_1, window_bounds = array<i64: 32, 128>}, {pipeline_mode = #tpu.pipeline_mode<synchronous>, transform_indices = @transform_2, window_bounds = array<i64: 128, 128>}, {pipeline_mode = #tpu.pipeline_mode<synchronous>, transform_indices = @transform_3, window_bounds = array<i64: 1, 128>}, {pipeline_mode = #tpu.pipeline_mode<synchronous>, transform_indices = @transform_4, window_bounds = array<i64: 8, 128>}, {pipeline_mode = #tpu.pipeline_mode<synchronous>, transform_indices = @transform_5, window_bounds = array<i64: 8, 128>}]} {
    %c0_i32 = arith.constant 0 : i32
    %0 = arith.cmpi eq, %arg0, %c0_i32 : i32
    %1 = arith.extui %0 : i1 to i32
    %c0_i32_0 = arith.constant 0 : i32
    %2 = arith.cmpi ne, %1, %c0_i32_0 : i32
    scf.if %2 {
      %cst_13 = arith.constant 0.000000e+00 : f32
      %29 = vector.broadcast %cst_13 : f32 to vector<8x128xf32>
      %c0_14 = arith.constant 0 : index
      %c0_15 = arith.constant 0 : index
      %30 = vector.load %arg7[%c0_14, %c0_15] : memref<8x128xf32, #tpu.memory_space<vmem>>, vector<8x128xf32>
      tpu.vector_store %arg7[%c0_14, %c0_15], %29 {strides = array<i32>} : memref<8x128xf32, #tpu.memory_space<vmem>>, vector<8x128xf32>,
    } else {
    }
    %c0 = arith.constant 0 : index
    %c0_1 = arith.constant 0 : index
    %3 = vector.load %arg1[%c0, %c0_1] : memref<32x512xbf16, #tpu.memory_space<vmem>>, vector<32x512xbf16>
    %c0_2 = arith.constant 0 : index
    %c0_3 = arith.constant 0 : index
    %4 = vector.load %arg2[%c0_2, %c0_3] : memref<32x128xbf16, #tpu.memory_space<vmem>>, vector<32x128xbf16>
    %cst = arith.constant dense<0.000000e+00> : vector<512x128xf32>
    %5 = tpu.matmul %3, %4, %cst {dimension_numbers = #tpu.dot_dimension_numbers<[0], [0], [1], [1], [0, 1, 1, 1], [], []>} : vector<32x512xbf16>, vector<32x128xbf16>, vector<512x128xf32> -> vector<512x128xf32>
    %cst_4 = arith.constant 0.000000e+00 : f32
    %6 = vector.broadcast %cst_4 : f32 to vector<512x128xf32>
    %7 = arith.maximumf %5, %6 : vector<512x128xf32>
    %8 = tpu.iota {dimensions = array<i32: 0>} : vector<8x512xi32>
    %9 = tpu.iota {dimensions = array<i32: 1>} : vector<8x512xi32>
    %c512_i32 = arith.constant 512 : i32
    %10 = arith.muli %arg0, %c512_i32 : i32
    %11 = vector.broadcast %10 : i32 to vector<8x512xi32>
    %12 = arith.addi %9, %11 : vector<8x512xi32>
    %c196_i32 = arith.constant 196 : i32
    %13 = vector.broadcast %c196_i32 : i32 to vector<8x512xi32>
    %14 = arith.muli %8, %13 : vector<8x512xi32>
    %15 = arith.cmpi sge, %12, %14 : vector<8x512xi32>
    %c196_i32_5 = arith.constant 196 : i32
    %16 = vector.broadcast %c196_i32_5 : i32 to vector<8x512xi32>
    %17 = arith.addi %14, %16 : vector<8x512xi32>
    %18 = arith.cmpi slt, %12, %17 : vector<8x512xi32>
    %19 = arith.andi %15, %18 : vector<8x512xi1>
    %c0_6 = arith.constant 0 : index
    %c0_7 = arith.constant 0 : index
    %20 = vector.load %arg7[%c0_6, %c0_7] : memref<8x128xf32, #tpu.memory_space<vmem>>, vector<8x128xf32>
    %21 = arith.extui %19 : vector<8x512xi1> to vector<8x512xi32>
    %22 = arith.sitofp %21 : vector<8x512xi32> to vector<8x512xf32>
    %cst_8 = arith.constant dense<0.000000e+00> : vector<8x128xf32>
    %23 = tpu.matmul %22, %7, %cst_8 {dimension_numbers = #tpu.dot_dimension_numbers<[1], [0], [0], [1], [0, 0, 1, 1], [], []>} : vector<8x512xf32>, vector<512x128xf32>, vector<8x128xf32> -> vector<8x128xf32>
    %24 = arith.addf %20, %23 : vector<8x128xf32>
    %c0_9 = arith.constant 0 : index
    %c0_10 = arith.constant 0 : index
    %25 = vector.load %arg7[%c0_9, %c0_10] : memref<8x128xf32, #tpu.memory_space<vmem>>, vector<8x128xf32>
    tpu.vector_store %arg7[%c0_9, %c0_10], %24 {strides = array<i32>} : memref<8x128xf32, #tpu.memory_space<vmem>>, vector<8x128xf32>,
    %c0_i32_11 = arith.constant 0 : i32
    %26 = arith.cmpi eq, %arg0, %c0_i32_11 : i32
    %27 = arith.extui %26 : i1 to i32
    %c0_i32_12 = arith.constant 0 : i32
    %28 = arith.cmpi ne, %27, %c0_i32_12 : i32
    scf.if %28 {
      %c0_13 = arith.constant 0 : index
      %c0_14 = arith.constant 0 : index
      %29 = vector.load %arg7[%c0_13, %c0_14] : memref<8x128xf32, #tpu.memory_space<vmem>>, vector<8x128xf32>
      %cst_15 = arith.constant 0.00510204071 : f32
      %30 = vector.broadcast %cst_15 : f32 to vector<8x128xf32>
      %31 = arith.mulf %29, %30 : vector<8x128xf32>
      %c0_16 = arith.constant 0 : index
      %c0_17 = arith.constant 0 : index
      %32 = vector.load %arg6[%c0_16, %c0_17] : memref<8x128xf32, #tpu.memory_space<vmem>>, vector<8x128xf32>
      tpu.vector_store %arg6[%c0_16, %c0_17], %31 {strides = array<i32>} : memref<8x128xf32, #tpu.memory_space<vmem>>, vector<8x128xf32>,
      %33 = arith.truncf %31 : vector<8x128xf32> to vector<8x128xbf16>
      %c0_18 = arith.constant 0 : index
      %c0_19 = arith.constant 0 : index
      %34 = vector.load %arg3[%c0_18, %c0_19] : memref<128x128xbf16, #tpu.memory_space<vmem>>, vector<128x128xbf16>
      %cst_20 = arith.constant dense<0.000000e+00> : vector<8x128xf32>
      %35 = tpu.matmul %33, %34, %cst_20 {dimension_numbers = #tpu.dot_dimension_numbers<[1], [0], [0], [1], [0, 0, 1, 1], [], []>} : vector<8x128xbf16>, vector<128x128xbf16>, vector<8x128xf32> -> vector<8x128xf32>
      %c0_21 = arith.constant 0 : index
      %c0_22 = arith.constant 0 : index
      %36 = vector.load %arg4[%c0_21, %c0_22] : memref<1x128xf32, #tpu.memory_space<vmem>>, vector<1x128xf32>
      %37 = vector.broadcast %36 : vector<1x128xf32> to vector<8x128xf32>
      %38 = arith.addf %35, %37 : vector<8x128xf32>
      %c0_23 = arith.constant 0 : index
      %c0_24 = arith.constant 0 : index
      %39 = vector.load %arg5[%c0_23, %c0_24] : memref<8x128xf32, #tpu.memory_space<vmem>>, vector<8x128xf32>
      tpu.vector_store %arg5[%c0_23, %c0_24], %38 {strides = array<i32>} : memref<8x128xf32, #tpu.memory_space<vmem>>, vector<8x128xf32>,
    } else {
    }
    return
  }
  func.func @transform_0(%arg0: i32) -> (i32, i32) {
    %c0_i32 = arith.constant 0 : i32
    %c0_i32_0 = arith.constant 0 : i32
    return %c0_i32, %arg0 : i32, i32
  }
  func.func @transform_1(%arg0: i32) -> (i32, i32) {
    %c0_i32 = arith.constant 0 : i32
    %c0_i32_0 = arith.constant 0 : i32
    %c0_i32_1 = arith.constant 0 : i32
    return %c0_i32, %c0_i32_0 : i32, i32
  }
  func.func @transform_2(%arg0: i32) -> (i32, i32) {
    %c0_i32 = arith.constant 0 : i32
    %c0_i32_0 = arith.constant 0 : i32
    %c0_i32_1 = arith.constant 0 : i32
    return %c0_i32, %c0_i32_0 : i32, i32
  }
  func.func @transform_3(%arg0: i32) -> (i32, i32) {
    %c0_i32 = arith.constant 0 : i32
    %c0_i32_0 = arith.constant 0 : i32
    %c0_i32_1 = arith.constant 0 : i32
    return %c0_i32, %c0_i32_0 : i32, i32
  }
  func.func @transform_4(%arg0: i32) -> (i32, i32) {
    %c0_i32 = arith.constant 0 : i32
    %c0_i32_0 = arith.constant 0 : i32
    %c0_i32_1 = arith.constant 0 : i32
    return %c0_i32, %c0_i32_0 : i32, i32
  }
  func.func @transform_5(%arg0: i32) -> (i32, i32) {
    %c0_i32 = arith.constant 0 : i32
    %c0_i32_0 = arith.constant 0 : i32
    %c0_i32_1 = arith.constant 0 : i32
    return %c0_i32, %c0_i32_0 : i32, i32
  }
}

</mosaic_0001>

<bundles_post_ra>
// kernel: tpu_custom_call.1
= control target key start
LH: loop header
LB: loop body
LE: loop exit
PB: predicated region body
PF: predicated region fallthrough
CT: control target
= control target key end

     0   :  { %11 = vsyncpa [#allocation4], 0  ;;  %s1618_s0 = inlined_call_operand.hbm [shape: bf16[32,512], index: 0, kind: input, shape index: {}]   ;;  %s1619_s1 = inlined_call_operand.hbm [shape: bf16[32,128], index: 1, kind: input, shape index: {}]   ;;  %s1620_s2 = inlined_call_operand.hbm [shape: bf16[128,128], index: 2, kind: input, shape index: {}]   ;;  %s1621_s3 = inlined_call_operand.vmem [shape: f32[1,128], index: 3, kind: input, shape index: {}]   ;;  %s1622_s4 = inlined_call_operand.hbm [shape: f32[8,128], index: 4, kind: output, shape index: {0}]   ;;  %s1623_s5 = inlined_call_operand.hbm [shape: f32[8,128], index: 5, kind: output, shape index: {1}]  }
   0x1   :  { %12 = vsyncpa [#allocation7], 0 }
   0x2   :  { %13 = vsyncpa [#allocation5], 0 }
   0x3   :  { %14 = vsyncpa [#allocation11], 0  ;;  %s1450_s18 = smov [#allocation6]   ;;  %s1332_s22 = scalar_lea.hbm %s1619_s1, 256 }
   0x4   :  { %s32_s19 = sshll.u32 %s1450_s18, 4  ;;  %p1333_p0 = scmp.ne.s32.totalorder %s1619_s1, %s1332_s22  ;;  %s33_s19 = int_to_ptr.vmem [resolvable:$true] %s32_s19 }
   0x5   :  { %p1336_p1 = scmp.lt.u32.totalorder %s1332_s22, %s1619_s1 }
   0x7   :  { %p1338_p2 = pnand %p1336_p1, %p1333_p0 }
   0x9   :  { %1341 = shalt.err (!%p1338_p2)
}
   0xa   :  { %s1342_s27 = scalar_lea.vmem %s33_s19, 256  ;;  %p1347_p4 = scmp.lt.s32.totalorder %s33_s19, %s33_s19 }
   0xb   :  { %p1343_p3 = scmp.ne.s32.totalorder %s33_s19, %s1342_s27  ;;  %p1348_p5 = scmp.lt.s32.totalorder %s1342_s27, %s1342_s27 }
   0xd   :  { %p1349_p6 = por %p1348_p5, %p1347_p4 }
   0xf   :  { %p1350_p7 = pnand %p1349_p6, %p1343_p3 }
  0x11   :  { %1353 = shalt.err (!%p1350_p7)
}
  0x12   :  { %s1451_s28 = smov 64   ;;  %s1452_s29 = smov 4  }
  0x13   :  { %38 = dma.hbm_to_vmem [thread:$0]  %s1619_s1, 256, %s33_s19, [#allocation7], %s1451_s28, %s1451_s28, %s1452_s29  }
  0x14   :  { %s1453_s7 = smov [#allocation3]   ;;  %s1354_s11 = scalar_lea.hbm %s1618_s0, 1024 }
  0x15   :  { %s20_s8 = sshll.u32 %s1453_s7, 4  ;;  %p1355_p8 = scmp.ne.s32.totalorder %s1618_s0, %s1354_s11  ;;  %s21_s8 = int_to_ptr.vmem [resolvable:$true] %s20_s8 }
  0x16   :  { %p1358_p9 = scmp.lt.u32.totalorder %s1354_s11, %s1618_s0 }
  0x18   :  { %p1360_p10 = pnand %p1358_p9, %p1355_p8 }
  0x1a   :  { %1363 = shalt.err (!%p1360_p10)
}
  0x1b   :  { %s1364_s16 = scalar_lea.vmem %s21_s8, 1024  ;;  %p1369_p12 = scmp.lt.s32.totalorder %s21_s8, %s21_s8 }
  0x1c   :  { %p1365_p11 = scmp.ne.s32.totalorder %s21_s8, %s1364_s16  ;;  %p1370_p13 = scmp.lt.s32.totalorder %s1364_s16, %s1364_s16 }
  0x1e   :  { %p1371_p0 = por %p1370_p13, %p1369_p12 }
  0x20   :  { %p1372_p1 = pnand %p1371_p0, %p1365_p11 }
  0x22   :  { %1375 = shalt.err (!%p1372_p1)
}
  0x23   :  { %s1454_s1 = smov 256   ;;  %s1455_s17 = smov 16  }
  0x24   :  { %26 = dma.hbm_to_vmem [thread:$0]  %s1618_s0, 1024, %s21_s8, [#allocation4], %s1454_s1, %s1454_s1, %s1455_s17  }
  0x25   :  { %s1456_s20 = smov [#allocation8]   ;;  %s1376_s24 = scalar_lea.hbm %s1620_s2, 1024 }
  0x26   :  { %s44_s21 = sshll.u32 %s1456_s20, 4  ;;  %p1377_p2 = scmp.ne.s32.totalorder %s1620_s2, %s1376_s24  ;;  %s45_s21 = int_to_ptr.vmem [resolvable:$true] %s44_s21 }
  0x27   :  { %p1380_p3 = scmp.lt.u32.totalorder %s1376_s24, %s1620_s2 }
  0x29   :  { %p1382_p4 = pnand %p1380_p3, %p1377_p2 }
  0x2b   :  { %1385 = shalt.err (!%p1382_p4)
}
  0x2c   :  { %s1386_s6 = scalar_lea.vmem %s45_s21, 1024  ;;  %p1391_p6 = scmp.lt.s32.totalorder %s45_s21, %s45_s21 }
  0x2d   :  { %p1387_p5 = scmp.ne.s32.totalorder %s45_s21, %s1386_s6  ;;  %p1392_p7 = scmp.lt.s32.totalorder %s1386_s6, %s1386_s6 }
  0x2f   :  { %p1393_p8 = por %p1392_p7, %p1391_p6 }
  0x31   :  { %p1394_p9 = pnand %p1393_p8, %p1387_p5 }
  0x33   :  { %1397 = shalt.err (!%p1394_p9)
}
  0x34   :  { %50 = dma.hbm_to_vmem [thread:$0]  %s1620_s2, 1024, %s45_s21, [#allocation7], %s1451_s28, %s1451_s28, %s1452_s29  }
  0x35   :  { %1442 = dma.done.wait [#allocation4], 1024  }
  0x36   :  { %1443 = vsyncadd [#allocation4], 4294966272 }
  0x37   :  { %1444 = dma.done.wait [#allocation7], 1280  }
  0x38   :  { %1445 = vsyncadd [#allocation7], 4294966016  ;;  %v1310_v0 = vld [vmem:[#allocation3] ss:$16 sps:$4 sm:$0xff]   ;;  %v1314_v2 = vld [vmem:[#allocation3 + $0x4] ss:$16 sps:$4 sm:$0xff]   ;;  %v646_v42 = vlaneseq }
  0x39   :  { %120 = vxpose.xlu0.c.b16.start [1/2] (short) %v1310_v0, 128  ;;  %v1312_v1 = vld [vmem:[#allocation3 + $0x20] ss:$16 sps:$4 sm:$0xff]   ;;  %136 = vxpose.xlu1.c.b16.start [1/2] (short) %v1314_v2, 128  ;;  %v1315_v3 = vld [vmem:[#allocation3 + $0x24] ss:$16 sps:$4 sm:$0xff]   ;;  %v1323_v5 = vld [vmem:[#allocation6 + $0x8] sm:$0xff]   ;;  %vm196_vm0 = vcmask 261120  }
  0x3a   :  { %v1321_v4 = vld [vmem:[#allocation6] sm:$0xff]   ;;  %v1316_v6 = vld [vmem:[#allocation3 + $0x8] ss:$16 sps:$4 sm:$0xff]   ;;  %v1320_v7 = vld [vmem:[#allocation3 + $0xc] ss:$16 sps:$4 sm:$0xff]   ;;  %v647_v43 = vshrl.u32 %v646_v42, 7 }
  0x3b   :  { %1145 = vmatprep.subr.bf16.mxu0 %v1321_v4  ;;  %v1318_v8 = vld [vmem:[#allocation3 + $0x28] ss:$16 sps:$4 sm:$0xff]   ;;  %v1322_v9 = vld [vmem:[#allocation3 + $0x2c] ss:$16 sps:$4 sm:$0xff]   ;;  %v649_v44 = vand.u32 127, %v646_v42  ;;  %v1457_v48 = vmov 1.0  }
  0x3c   :  { %1146 = vmatpush3.bf16.msra.mxu0 %v1321_v4  ;;  %v659_v45 = vmul.u32 196, %v647_v43  ;;  %v1331_v63 = vld [vmem:[#allocation8 + $0x38] sm:$0xff]   ;;  %vm1459_vm13 = vmmov 0   ;;  %s1460_s2 = smov [#allocation10]  }
  0x3d   :  { %121 = vxpose.xlu0.c.b16.end [2/2] (short) %v1312_v1, 128  ;;  %137 = vxpose.xlu1.c.b16.end [2/2] (short) %v1315_v3, 128  ;;  %v650_v46 = vadd.s32 128, %v649_v44  ;;  %v652_v56 = vadd.s32 384, %v649_v44  ;;  %v651_v59 = vadd.s32 256, %v649_v44  ;;  %s959_s28 = sshll.u32 %s1460_s2, 4  ;;  %s960_s28 = int_to_ptr.vmem [resolvable:$true] %s959_s28 }
  0x3e   :  { %1147 = vmatprep.subr.bf16.mxu0 %v1323_v5  ;;  %v664_v47 = vadd.s32 196, %v659_v45  ;;  %vm660_vm4 = vcmp.ge.s32.totalorder %v649_v44, %v659_v45  ;;  %s1398_s29 = scalar_lea.vmem %s960_s28, 128  ;;  %p1403_p11 = scmp.lt.s32.totalorder %s960_s28, %s960_s28 }
  0x3f   :  { %vm661_vm1 = vcmp.ge.s32.totalorder %v650_v46, %v659_v45  ;;  %vm663_vm7 = vcmp.ge.s32.totalorder %v652_v56, %v659_v45  ;;  %vm662_vm10 = vcmp.ge.s32.totalorder %v651_v59, %v659_v45  ;;  %p1399_p10 = scmp.ne.s32.totalorder %s960_s28, %s1398_s29  ;;  %p1404_p12 = scmp.lt.s32.totalorder %s1398_s29, %s1398_s29 }
  0x40   :  { %1148 = vmatpush3.bf16.msra.mxu0 %v1323_v5  ;;  %vm666_vm2 = vcmp.lt.s32.totalorder %v650_v46, %v664_v47  ;;  %vm665_vm5 = vcmp.lt.s32.totalorder %v649_v44, %v664_v47  ;;  %vm668_vm8 = vcmp.lt.s32.totalorder %v652_v56, %v664_v47  ;;  %vm667_vm11 = vcmp.lt.s32.totalorder %v651_v59, %v664_v47 }
  0x41   :  { %vm670_vm3 = vmand %vm661_vm1, %vm666_vm2  ;;  %p1405_p13 = por %p1404_p12, %p1403_p11 }
  0x42   :  { %1019 = vmatprep.mubr.msk.f32.mxu1 %vm670_vm3, %v1457_v48  ;;  %vm1567_vm6 = vmand %vm660_vm4, %vm665_vm5 }
  0x43   :  { %vm1571_vm9 = vmand %vm663_vm7, %vm668_vm8  ;;  %p1406_p0 = pnand %p1405_p13, %p1399_p10 }
  0x44   :  { %vm1575_vm12 = vmand %vm662_vm10, %vm667_vm11 }
  0x56   :  { %152 = vxpose.xlu0.c.b16.start [1/2] (short) %v1316_v6, 128  ;;  %168 = vxpose.xlu1.c.b16.start [1/2] (short) %v1320_v7, 128 }
  0x5a   :  { %153 = vxpose.xlu0.c.b16.end [2/2] (short) %v1318_v8, 128  ;;  %169 = vxpose.xlu1.c.b16.end [2/2] (short) %v1322_v9, 128 }
  0x9f   :  { %v128_v10 = vpop.trf.xlu0  ;;  %v144_v14 = vpop.trf.xlu1 }
  0xa0   :  { %1149 = vmatprep.mubr.msk.bf16.mxu0 %vm196_vm0, %v128_v10 }
  0xa3   :  { %v129_v11 = vpop.trf.xlu0  ;;  %v145_v17 = vpop.trf.xlu1 }
  0xa4   :  { %1150 = vmatmul.mubr.msk.bf16.vlgmr.msra.gmra.mrb[0].mxu0 %vm196_vm0, %v129_v11 }
  0xa7   :  { %v130_v12 = vpop.trf.xlu0  ;;  %v146_v19 = vpop.trf.xlu1 }
  0xa8   :  { %1153 = vmatprep.mubr.msk.bf16.mxu0 %vm196_vm0, %v130_v12 }
  0xab   :  { %v131_v13 = vpop.trf.xlu0  ;;  %v147_v21 = vpop.trf.xlu1 }
  0xac   :  { %1154 = vmatmul.mubr.msk.bf16.gmra.mrb[4].mxu0 %vm196_vm0, %v131_v13 }
  0xaf   :  { %v132_v15 = vpop.trf.xlu0  ;;  %v148_v22 = vpop.trf.xlu1 }
  0xb0   :  { %1157 = vmatprep.mubr.msk.bf16.mxu0 %vm196_vm0, %v132_v15 }
  0xb3   :  { %v133_v16 = vpop.trf.xlu0  ;;  %v149_v23 = vpop.trf.xlu1 }
  0xb4   :  { %1158 = vmatmul.mubr.msk.bf16.gmra.mrb[8].mxu0 %vm196_vm0, %v133_v16 }
  0xb7   :  { %v134_v18 = vpop.trf.xlu0  ;;  %v150_v25 = vpop.trf.xlu1 }
  0xb8   :  { %1161 = vmatprep.mubr.msk.bf16.mxu0 %vm196_vm0, %v134_v18 }
  0xbb   :  { %v135_v20 = vpop.trf.xlu0  ;;  %v151_v27 = vpop.trf.xlu1 }
  0xbc   :  { %1162 = vmatmul.mubr.msk.bf16.gmra.mrb[12].mxu0 %vm196_vm0, %v135_v20 }
  0xbd   :  { %1165 = vmatprep.mubr.msk.bf16.mxu0 %vm196_vm0, %v144_v14 }
  0xbf   :  { %v160_v24 = vpop.trf.xlu0  ;;  %v176_v32 = vpop.trf.xlu1 }
  0xc3   :  { %v161_v26 = vpop.trf.xlu0  ;;  %v177_v34 = vpop.trf.xlu1 }
  0xc4   :  { %1166 = vmatmul.mubr.msk.bf16.gmra.mrb[16].mxu0 %vm196_vm0, %v145_v17 }
  0xc5   :  { %1169 = vmatprep.mubr.msk.bf16.mxu0 %vm196_vm0, %v146_v19 }
  0xc7   :  { %v162_v28 = vpop.trf.xlu0  ;;  %v178_v36 = vpop.trf.xlu1 }
  0xcb   :  { %v163_v29 = vpop.trf.xlu0  ;;  %v179_v37 = vpop.trf.xlu1 }
  0xcc   :  { %1170 = vmatmul.mubr.msk.bf16.gmra.mrb[20].mxu0 %vm196_vm0, %v147_v21 }
  0xcd   :  { %1173 = vmatprep.mubr.msk.bf16.mxu0 %vm196_vm0, %v148_v22 }
  0xcf   :  { %v164_v30 = vpop.trf.xlu0  ;;  %v180_v38 = vpop.trf.xlu1 }
  0xd3   :  { %v165_v31 = vpop.trf.xlu0  ;;  %v181_v39 = vpop.trf.xlu1 }
  0xd4   :  { %1174 = vmatmul.mubr.msk.bf16.gmra.mrb[24].mxu0 %vm196_vm0, %v149_v23 }
  0xd5   :  { %1177 = vmatprep.mubr.msk.bf16.mxu0 %vm196_vm0, %v150_v25 }
  0xd7   :  { %v166_v33 = vpop.trf.xlu0  ;;  %v182_v40 = vpop.trf.xlu1 }
  0xdb   :  { %v167_v35 = vpop.trf.xlu0  ;;  %v183_v41 = vpop.trf.xlu1 }
  0xdc   :  { %1178 = vmatmul.mubr.msk.bf16.gmra.mrb[28].mxu0 %vm196_vm0, %v151_v27 }
  0xdd   :  { %1181 = vmatprep.mubr.msk.bf16.mxu0 %vm196_vm0, %v160_v24 }
  0xe4   :  { %1182 = vmatmul.mubr.msk.bf16.gmra.mrb[32].mxu0 %vm196_vm0, %v161_v26 }
  0xe5   :  { %1185 = vmatprep.mubr.msk.bf16.mxu0 %vm196_vm0, %v162_v28 }
  0xec   :  { %1186 = vmatmul.mubr.msk.bf16.gmra.mrb[36].mxu0 %vm196_vm0, %v163_v29 }
  0xed   :  { %1189 = vmatprep.mubr.msk.bf16.mxu0 %vm196_vm0, %v164_v30 }
  0xf4   :  { %1190 = vmatmul.mubr.msk.bf16.gmra.mrb[40].mxu0 %vm196_vm0, %v165_v31 }
  0xf5   :  { %1193 = vmatprep.mubr.msk.bf16.mxu0 %vm196_vm0, %v166_v33 }
  0xfc   :  { %1194 = vmatmul.mubr.msk.bf16.gmra.mrb[44].mxu0 %vm196_vm0, %v167_v35 }
  0xfd   :  { %1197 = vmatprep.mubr.msk.bf16.mxu0 %vm196_vm0, %v176_v32 }
 0x104   :  { %1198 = vmatmul.mubr.msk.bf16.gmra.mrb[48].mxu0 %vm196_vm0, %v177_v34 }
 0x105   :  { %1201 = vmatprep.mubr.msk.bf16.mxu0 %vm196_vm0, %v178_v36 }
 0x10c   :  { %1202 = vmatmul.mubr.msk.bf16.gmra.mrb[52].mxu0 %vm196_vm0, %v179_v37 }
 0x10d   :  { %1205 = vmatprep.mubr.msk.bf16.mxu0 %vm196_vm0, %v180_v38 }
 0x114   :  { %1206 = vmatmul.mubr.msk.bf16.gmra.mrb[56].mxu0 %vm196_vm0, %v181_v39 }
 0x115   :  { %1209 = vmatprep.mubr.msk.bf16.mxu0 %vm196_vm0, %v182_v40 }
 0x11c   :  { %1210 = vmatmul.mubr.msk.bf16.gmra.mrb[60].mxu0 %vm196_vm0, %v183_v41 }
 0x177   :  { %v1151_v50 = vpop.f32.mrb[0].mxu0 }
 0x178   :  { %v327_v51 = vpop.f32.mrb[1].mxu0  ;;  %v584_v53 = vmax.f32 %v1151_v50, 0.0 }
 0x179   :  { %v1152_v52 = vpop.f32.mrb[2].mxu0  ;;  %v582_v57 = vmax.f32 %v327_v51, 0.0 }
 0x17a   :  { %v585_v54 = vmax.f32 %v1152_v52, 0.0  ;;  %v330_v55 = vpop.f32.mrb[3].mxu0 }
 0x17b   :  { %v583_v58 = vmax.f32 %v330_v55, 0.0 }
 0x17c   :  { %v1239_v60 = vpack.c.bf16 %v585_v54, %v584_v53 }
 0x17d   :  { %v1235_v61 = vpack.c.bf16 %v583_v58, %v582_v57 }
 0x17f   :  { %v1155_v0 = vpop.f32.mrb[4].mxu0 }
 0x180   :  { %v343_v1 = vpop.f32.mrb[5].mxu0  ;;  %v588_v3 = vmax.f32 %v1155_v0, 0.0 }
 0x181   :  { %v1156_v2 = vpop.f32.mrb[6].mxu0  ;;  %v586_v6 = vmax.f32 %v343_v1, 0.0 }
 0x182   :  { %v589_v4 = vmax.f32 %v1156_v2, 0.0  ;;  %v346_v5 = vpop.f32.mrb[7].mxu0 }
 0x183   :  { %v587_v7 = vmax.f32 %v346_v5, 0.0 }
 0x184   :  { %v1247_v8 = vpack.c.bf16 %v589_v4, %v588_v3 }
 0x185   :  { %v1243_v9 = vpack.c.bf16 %v587_v7, %v586_v6 }
 0x187   :  { %v1159_v10 = vpop.f32.mrb[8].mxu0 }
 0x188   :  { %v359_v11 = vpop.f32.mrb[9].mxu0  ;;  %v592_v13 = vmax.f32 %v1159_v10, 0.0 }
 0x189   :  { %v1160_v12 = vpop.f32.mrb[10].mxu0  ;;  %v590_v16 = vmax.f32 %v359_v11, 0.0 }
 0x18a   :  { %v593_v14 = vmax.f32 %v1160_v12, 0.0  ;;  %v362_v15 = vpop.f32.mrb[11].mxu0 }
 0x18b   :  { %v591_v17 = vmax.f32 %v362_v15, 0.0 }
 0x18c   :  { %v1255_v18 = vpack.c.bf16 %v593_v14, %v592_v13 }
 0x18d   :  { %v1251_v19 = vpack.c.bf16 %v591_v17, %v590_v16 }
 0x18f   :  { %v1163_v20 = vpop.f32.mrb[12].mxu0 }
 0x190   :  { %v375_v21 = vpop.f32.mrb[13].mxu0  ;;  %v596_v23 = vmax.f32 %v1163_v20, 0.0 }
 0x191   :  { %v1164_v22 = vpop.f32.mrb[14].mxu0  ;;  %v594_v26 = vmax.f32 %v375_v21, 0.0 }
 0x192   :  { %v597_v24 = vmax.f32 %v1164_v22, 0.0  ;;  %v378_v25 = vpop.f32.mrb[15].mxu0 }
 0x193   :  { %v595_v27 = vmax.f32 %v378_v25, 0.0 }
 0x194   :  { %v1579_v28 = vpack.c.bf16 %v597_v24, %v596_v23 }
 0x195   :  { %v1259_v29 = vpack.c.bf16 %v595_v27, %v594_v26 }
 0x197   :  { %v1167_v30 = vpop.f32.mrb[16].mxu0 }
 0x198   :  { %v391_v31 = vpop.f32.mrb[17].mxu0  ;;  %v600_v33 = vmax.f32 %v1167_v30, 0.0 }
 0x199   :  { %v1168_v32 = vpop.f32.mrb[18].mxu0  ;;  %v598_v36 = vmax.f32 %v391_v31, 0.0 }
 0x19a   :  { %v601_v34 = vmax.f32 %v1168_v32, 0.0  ;;  %v394_v35 = vpop.f32.mrb[19].mxu0 }
 0x19b   :  { %v599_v37 = vmax.f32 %v394_v35, 0.0 }
 0x19c   :  { %v1237_v38 = vpack.c.bf16 %v601_v34, %v600_v33 }
 0x19d   :  { %v1233_v39 = vpack.c.bf16 %v599_v37, %v598_v36 }
 0x19f   :  { %v1171_v40 = vpop.f32.mrb[20].mxu0  ;;  %1234 = vmatprep.subr.bf16.mxu1 %v1233_v39 }
 0x1a0   :  { %v407_v41 = vpop.f32.mrb[21].mxu0  ;;  %1236 = vmatpush3.bf16.msra.mxu1 %v1235_v61  ;;  %v604_v43 = vmax.f32 %v1171_v40, 0.0 }
 0x1a1   :  { %v1172_v42 = vpop.f32.mrb[22].mxu0  ;;  %1238 = vmatprep.subr.bf16.mxu1 %v1237_v38  ;;  %v602_v46 = vmax.f32 %v407_v41, 0.0 }
 0x1a2   :  { %v605_v44 = vmax.f32 %v1172_v42, 0.0  ;;  %v410_v45 = vpop.f32.mrb[23].mxu0 }
 0x1a3   :  { %v603_v47 = vmax.f32 %v410_v45, 0.0 }
 0x1a4   :  { %v1245_v50 = vpack.c.bf16 %v605_v44, %v604_v43  ;;  %1240 = vmatpush3.bf16.msra.mxu1 %v1239_v60 }
 0x1a5   :  { %v1241_v51 = vpack.c.bf16 %v603_v47, %v602_v46 }
 0x1a7   :  { %v1175_v52 = vpop.f32.mrb[24].mxu0  ;;  %1242 = vmatprep.subr.bf16.mxu1 %v1241_v51 }
 0x1a8   :  { %v423_v53 = vpop.f32.mrb[25].mxu0  ;;  %1244 = vmatpush3.bf16.msra.mxu1 %v1243_v9  ;;  %v608_v55 = vmax.f32 %v1175_v52, 0.0 }
 0x1a9   :  { %v1176_v54 = vpop.f32.mrb[26].mxu0  ;;  %1246 = vmatprep.subr.bf16.mxu1 %v1245_v50  ;;  %v606_v58 = vmax.f32 %v423_v53, 0.0 }
 0x1aa   :  { %v609_v56 = vmax.f32 %v1176_v54, 0.0  ;;  %v426_v57 = vpop.f32.mrb[27].mxu0 }
 0x1ab   :  { %v607_v59 = vmax.f32 %v426_v57, 0.0 }
 0x1ac   :  { %v1253_v61 = vpack.c.bf16 %v609_v56, %v608_v55  ;;  %1248 = vmatpush3.bf16.msra.mxu1 %v1247_v8 }
 0x1ad   :  { %v1249_v0 = vpack.c.bf16 %v607_v59, %v606_v58 }
 0x1af   :  { %v1179_v1 = vpop.f32.mrb[28].mxu0  ;;  %1250 = vmatprep.subr.bf16.mxu1 %v1249_v0 }
 0x1b0   :  { %v439_v2 = vpop.f32.mrb[29].mxu0  ;;  %1252 = vmatpush3.bf16.msra.mxu1 %v1251_v19  ;;  %v612_v3 = vmax.f32 %v1179_v1, 0.0 }
 0x1b1   :  { %v1180_v60 = vpop.f32.mrb[30].mxu0  ;;  %1254 = vmatprep.subr.bf16.mxu1 %v1253_v61  ;;  %v610_v6 = vmax.f32 %v439_v2, 0.0 }
 0x1b2   :  { %v613_v4 = vmax.f32 %v1180_v60, 0.0  ;;  %v442_v5 = vpop.f32.mrb[31].mxu0 }
 0x1b3   :  { %v611_v7 = vmax.f32 %v442_v5, 0.0 }
 0x1b4   :  { %v1261_v9 = vpack.c.bf16 %v613_v4, %v612_v3  ;;  %1256 = vmatpush3.bf16.msra.mxu1 %v1255_v18 }
 0x1b5   :  { %v1257_v10 = vpack.c.bf16 %v611_v7, %v610_v6 }
 0x1b7   :  { %v1183_v11 = vpop.f32.mrb[32].mxu0  ;;  %1258 = vmatprep.subr.bf16.mxu1 %v1257_v10 }
 0x1b8   :  { %v455_v12 = vpop.f32.mrb[33].mxu0  ;;  %1260 = vmatpush3.bf16.msra.mxu1 %v1259_v29  ;;  %v616_v13 = vmax.f32 %v1183_v11, 0.0 }
 0x1b9   :  { %v1184_v8 = vpop.f32.mrb[34].mxu0  ;;  %1262 = vmatprep.subr.bf16.mxu1 %v1261_v9  ;;  %v614_v16 = vmax.f32 %v455_v12, 0.0 }
 0x1ba   :  { %v617_v14 = vmax.f32 %v1184_v8, 0.0  ;;  %v458_v15 = vpop.f32.mrb[35].mxu0 }
 0x1bb   :  { %v615_v17 = vmax.f32 %v458_v15, 0.0 }
 0x1bc   :  { %v1271_v19 = vpack.c.bf16 %v617_v14, %v616_v13  ;;  %1264 = vmatpush3.bf16.msra.mxu1 %v1579_v28 }
 0x1bd   :  { %v1267_v20 = vpack.c.bf16 %v615_v17, %v614_v16 }
 0x1bf   :  { %v1187_v21 = vpop.f32.mrb[36].mxu0  ;;  %1020 = vmatmul.mubr.msk.f32.vlgmr.msra.gmra.mrb[0].mxu1 %vm1567_vm6, %v1457_v48 }
 0x1c0   :  { %v471_v18 = vpop.f32.mrb[37].mxu0  ;;  %1021 = vmatprep.mubr.msk.f32.mxu1 %vm1571_vm9, %v1457_v48  ;;  %v620_v23 = vmax.f32 %v1187_v21, 0.0 }
 0x1c1   :  { %v1188_v22 = vpop.f32.mrb[38].mxu0  ;;  %v618_v26 = vmax.f32 %v471_v18, 0.0 }
 0x1c2   :  { %v621_v24 = vmax.f32 %v1188_v22, 0.0  ;;  %v474_v25 = vpop.f32.mrb[39].mxu0 }
 0x1c3   :  { %v619_v27 = vmax.f32 %v474_v25, 0.0 }
 0x1c4   :  { %v1279_v29 = vpack.c.bf16 %v621_v24, %v620_v23 }
 0x1c5   :  { %v1275_v30 = vpack.c.bf16 %v619_v27, %v618_v26 }
 0x1c7   :  { %v1191_v28 = vpop.f32.mrb[40].mxu0 }
 0x1c8   :  { %v487_v31 = vpop.f32.mrb[41].mxu0  ;;  %v624_v33 = vmax.f32 %v1191_v28, 0.0  ;;  %v1325_v28 = vld [vmem:[#allocation8 + $0x8] sm:$0xff]  }
 0x1c9   :  { %v1192_v32 = vpop.f32.mrb[42].mxu0  ;;  %v622_v35 = vmax.f32 %v487_v31, 0.0  ;;  %v1326_v31 = vld [vmem:[#allocation8 + $0x10] sm:$0xff]  }
 0x1ca   :  { %v625_v34 = vmax.f32 %v1192_v32, 0.0  ;;  %v490_v49 = vpop.f32.mrb[43].mxu0  ;;  %v1327_v32 = vld [vmem:[#allocation8 + $0x18] sm:$0xff]  }
 0x1cb   :  { %v623_v36 = vmax.f32 %v490_v49, 0.0 }
 0x1cc   :  { %v1287_v37 = vpack.c.bf16 %v625_v34, %v624_v33  ;;  %v1328_v33 = vld [vmem:[#allocation8 + $0x20] sm:$0xff]   ;;  %v1329_v34 = vld [vmem:[#allocation8 + $0x28] sm:$0xff]  }
 0x1cd   :  { %v1283_v38 = vpack.c.bf16 %v623_v36, %v622_v35 }
 0x1cf   :  { %v1195_v62 = vpop.f32.mrb[44].mxu0 }
 0x1d0   :  { %v503_v39 = vpop.f32.mrb[45].mxu0  ;;  %v628_v41 = vmax.f32 %v1195_v62, 0.0 }
 0x1d1   :  { %v1196_v40 = vpop.f32.mrb[46].mxu0  ;;  %v626_v44 = vmax.f32 %v503_v39, 0.0 }
 0x1d2   :  { %v629_v42 = vmax.f32 %v1196_v40, 0.0  ;;  %v506_v43 = vpop.f32.mrb[47].mxu0 }
 0x1d3   :  { %v627_v45 = vmax.f32 %v506_v43, 0.0 }
 0x1d4   :  { %v1295_v46 = vpack.c.bf16 %v629_v42, %v628_v41 }
 0x1d5   :  { %v1291_v47 = vpack.c.bf16 %v627_v45, %v626_v44 }
 0x1d7   :  { %v1199_v50 = vpop.f32.mrb[48].mxu0 }
 0x1d8   :  { %v519_v51 = vpop.f32.mrb[49].mxu0  ;;  %v632_v53 = vmax.f32 %v1199_v50, 0.0 }
 0x1d9   :  { %v1200_v52 = vpop.f32.mrb[50].mxu0  ;;  %v630_v56 = vmax.f32 %v519_v51, 0.0 }
 0x1da   :  { %v633_v54 = vmax.f32 %v1200_v52, 0.0  ;;  %v522_v55 = vpop.f32.mrb[51].mxu0 }
 0x1db   :  { %v631_v57 = vmax.f32 %v522_v55, 0.0 }
 0x1dc   :  { %v1269_v58 = vpack.c.bf16 %v633_v54, %v632_v53 }
 0x1dd   :  { %v1265_v59 = vpack.c.bf16 %v631_v57, %v630_v56 }
 0x1df   :  { %v1203_v61 = vpop.f32.mrb[52].mxu0  ;;  %1266 = vmatprep.subr.bf16.mxu1 %v1265_v59 }
 0x1e0   :  { %v535_v0 = vpop.f32.mrb[53].mxu0  ;;  %1268 = vmatpush3.bf16.msra.mxu1 %v1267_v20  ;;  %v636_v2 = vmax.f32 %v1203_v61, 0.0 }
 0x1e1   :  { %v1204_v1 = vpop.f32.mrb[54].mxu0  ;;  %1270 = vmatprep.subr.bf16.mxu1 %v1269_v58  ;;  %v634_v4 = vmax.f32 %v535_v0, 0.0 }
 0x1e2   :  { %v637_v60 = vmax.f32 %v1204_v1, 0.0  ;;  %v538_v3 = vpop.f32.mrb[55].mxu0 }
 0x1e3   :  { %v635_v5 = vmax.f32 %v538_v3, 0.0 }
 0x1e4   :  { %v1277_v6 = vpack.c.bf16 %v637_v60, %v636_v2  ;;  %1272 = vmatpush3.bf16.msra.mxu1 %v1271_v19 }
 0x1e5   :  { %v1273_v7 = vpack.c.bf16 %v635_v5, %v634_v4 }
 0x1e7   :  { %v1207_v9 = vpop.f32.mrb[56].mxu0  ;;  %1274 = vmatprep.subr.bf16.mxu1 %v1273_v7 }
 0x1e8   :  { %v551_v10 = vpop.f32.mrb[57].mxu0  ;;  %1276 = vmatpush3.bf16.msra.mxu1 %v1275_v30  ;;  %v640_v12 = vmax.f32 %v1207_v9, 0.0  ;;  %v1458_v30 = vmov 0.0  }
 0x1e9   :  { %v1208_v11 = vpop.f32.mrb[58].mxu0  ;;  %1278 = vmatprep.subr.bf16.mxu1 %v1277_v6  ;;  %v638_v14 = vmax.f32 %v551_v10, 0.0 }
 0x1ea   :  { %v641_v8 = vmax.f32 %v1208_v11, 0.0  ;;  %v554_v13 = vpop.f32.mrb[59].mxu0 }
 0x1eb   :  { %v639_v15 = vmax.f32 %v554_v13, 0.0 }
 0x1ec   :  { %v1285_v16 = vpack.c.bf16 %v641_v8, %v640_v12  ;;  %1280 = vmatpush3.bf16.msra.mxu1 %v1279_v29  ;;  %v1324_v29 = vld [vmem:[#allocation8] sm:$0xff]  }
 0x1ed   :  { %v1281_v17 = vpack.c.bf16 %v639_v15, %v638_v14 }
 0x1ef   :  { %v1211_v20 = vpop.f32.mrb[60].mxu0  ;;  %1282 = vmatprep.subr.bf16.mxu1 %v1281_v17 }
 0x1f0   :  { %v567_v21 = vpop.f32.mrb[61].mxu0  ;;  %1284 = vmatpush3.bf16.msra.mxu1 %v1283_v38  ;;  %v644_v18 = vmax.f32 %v1211_v20, 0.0 }
 0x1f1   :  { %v1212_v19 = vpop.f32.mrb[62].mxu0  ;;  %1286 = vmatprep.subr.bf16.mxu1 %v1285_v16  ;;  %v642_v24 = vmax.f32 %v567_v21, 0.0 }
 0x1f2   :  { %v645_v22 = vmax.f32 %v1212_v19, 0.0  ;;  %v570_v23 = vpop.f32.mrb[63].mxu0 }
 0x1f3   :  { %v643_v25 = vmax.f32 %v570_v23, 0.0 }
 0x1f4   :  { %v1293_v26 = vpack.c.bf16 %v645_v22, %v644_v18  ;;  %1288 = vmatpush3.bf16.msra.mxu1 %v1287_v37 }
 0x1f5   :  { %v1289_v27 = vpack.c.bf16 %v643_v25, %v642_v24 }
 0x1f7   :  { %1290 = vmatprep.subr.bf16.mxu1 %v1289_v27 }
 0x1f8   :  { %1292 = vmatpush3.bf16.msra.mxu1 %v1291_v47 }
 0x1f9   :  { %1294 = vmatprep.subr.bf16.mxu1 %v1293_v26 }
 0x1fc   :  { %1296 = vmatpush3.bf16.msra.mxu1 %v1295_v46 }
 0x1fd   :  { %1213 = vmatprep.subr.bf16.mxu1 %v1458_v30 }
 0x1ff   :  { %1022 = vmatmul.mubr.msk.f32.vlgmr.msra.gmra.mrb[2].mxu1 %vm1575_vm12, %v1457_v48  ;;  %v1330_v48 = vld [vmem:[#allocation8 + $0x30] sm:$0xff]  }
 0x200   :  { %1214 = vmatpush3.bf16.msra.mxu1 %v1324_v29  ;;  %1229 = vmatprep.mubr.msk.bf16.mxu1 %vm1459_vm13, %v1458_v30 }
 0x201   :  { %1215 = vmatprep.subr.bf16.mxu1 %v1458_v30 }
 0x204   :  { %1216 = vmatpush3.bf16.msra.mxu1 %v1325_v28 }
 0x205   :  { %1217 = vmatprep.subr.bf16.mxu1 %v1458_v30 }
 0x208   :  { %1218 = vmatpush3.bf16.msra.mxu1 %v1326_v31 }
 0x209   :  { %1219 = vmatprep.subr.bf16.mxu1 %v1458_v30 }
 0x20c   :  { %1220 = vmatpush3.bf16.msra.mxu1 %v1327_v32 }
 0x20d   :  { %1221 = vmatprep.subr.bf16.mxu1 %v1458_v30 }
 0x210   :  { %1222 = vmatpush3.bf16.msra.mxu1 %v1328_v33 }
 0x211   :  { %1223 = vmatprep.subr.bf16.mxu1 %v1458_v30 }
 0x214   :  { %1224 = vmatpush3.bf16.msra.mxu1 %v1329_v34 }
 0x215   :  { %1225 = vmatprep.subr.bf16.mxu1 %v1458_v30 }
 0x218   :  { %1226 = vmatpush3.bf16.msra.mxu1 %v1330_v48 }
 0x219   :  { %1227 = vmatprep.subr.bf16.mxu1 %v1458_v30 }
 0x21c   :  { %1228 = vmatpush3.bf16.msra.mxu1 %v1331_v63 }
 0x292   :  { %v1098_v49 = vpop.f32.mrb[0].mxu1 }
 0x293   :  { %v1099_v35 = vpop.f32.mrb[1].mxu1 }
 0x294   :  { %v1100_v36 = vadd.f32 %v1099_v35, %v1098_v49 }
 0x2d2   :  { %v1133_v37 = vpop.f32.mrb[2].mxu1 }
 0x2d3   :  { %v1134_v38 = vpop.f32.mrb[3].mxu1 }
 0x2d4   :  { %v1135_v62 = vadd.f32 %v1134_v38, %v1133_v37 }
 0x2d6   :  { %v819_v39 = vadd.f32 %v1135_v62, %v1100_v36 }
 0x2d8   :  { %v828_v40 = vmul.f32 0.0051020407, %v819_v39 }
 0x2da   :  { %v830_v41 = vpack.c.bf16 %v828_v40, %v828_v40  ;;  %829 = vst [vmem:[#allocation10] sm:$0xff] %v828_v40 }
 0x2dc   :  { %1230 = vmatmul.mubr.bf16.vlgmr.msra.gmra.mrb[4].mxu1 %v830_v41 }
 0x2dd   :  { %1409 = shalt.err (!%p1406_p0)
}
 0x2de   :  { %s1410_s10 = scalar_lea.hbm %s1623_s5, 128 }
 0x2df   :  { %p1411_p1 = scmp.ne.s32.totalorder %s1623_s5, %s1410_s10  ;;  %p1414_p2 = scmp.lt.u32.totalorder %s1410_s10, %s1623_s5 }
 0x2e1   :  { %p1416_p3 = pnand %p1414_p2, %p1411_p1 }
 0x2e3   :  { %1419 = shalt.err (!%p1416_p3)
}
 0x2e4   :  { %962 = dma.vmem_to_hbm [thread:$0]  %s960_s28, 128, %s1623_s5, [#allocation11]   ;;  %v1023_v42 = vld [vmem:[%s1621_s3] ss:$0 sm:$0xff] }
 0x2e5   :  { %s1461_s18 = smov [#allocation9]  }
 0x2e6   :  { %s949_s19 = sshll.u32 %s1461_s18, 4  ;;  %s950_s19 = int_to_ptr.vmem [resolvable:$true] %s949_s19 }
 0x2e7   :  { %s1420_s20 = scalar_lea.vmem %s950_s19, 128  ;;  %p1425_p5 = scmp.lt.s32.totalorder %s950_s19, %s950_s19 }
 0x2e8   :  { %p1421_p4 = scmp.ne.s32.totalorder %s950_s19, %s1420_s20  ;;  %p1426_p6 = scmp.lt.s32.totalorder %s1420_s20, %s1420_s20 }
 0x2ea   :  { %p1427_p7 = por %p1426_p6, %p1425_p5 }
 0x2ec   :  { %p1428_p8 = pnand %p1427_p7, %p1421_p4 }
 0x3af   :  { %v936_v43 = vpop.f32.mrb[4].mxu1 }
 0x3b0   :  { %v937_v44 = vadd.f32 %v1023_v42, %v936_v43  ;;  %v1231_v45 = vpop.f32.mrb[5].mxu1 }
 0x3b1   :  { %v939_v46 = vpop.f32.mrb[6].mxu1 }
 0x3b2   :  { %942 = vst [vmem:[#allocation9] sm:$0xff] %v937_v44  ;;  %v1232_v47 = vpop.f32.mrb[7].mxu1 }
 0x3b3   :  { %1431 = shalt.err (!%p1428_p8)
}
 0x3b4   :  { %s1432_s3 = scalar_lea.hbm %s1622_s4, 128 }
 0x3b5   :  { %p1433_p9 = scmp.ne.s32.totalorder %s1622_s4, %s1432_s3  ;;  %p1436_p10 = scmp.lt.u32.totalorder %s1432_s3, %s1622_s4 }
 0x3b7   :  { %p1438_p11 = pnand %p1436_p10, %p1433_p9 }
 0x3b9   :  { %1441 = shalt.err (!%p1438_p11)
}
 0x3ba   :  { %952 = dma.vmem_to_hbm [thread:$0]  %s950_s19, 128, %s1622_s4, [#allocation5]  }
 0x3bb   :  { %1446 = dma.done.wait [#allocation5], 128  }
 0x3bc   :  { %1447 = vsyncadd [#allocation5], 4294967168 }
 0x3bd   :  { %1448 = dma.done.wait [#allocation11], 128  }
 0x3be   :  { %1449 = vsyncadd [#allocation11], 4294967168 }
 0x3bf   :  { %969 = vsyncpa [#allocation4], 1 }
 0x3c0   :  { %970 = vsyncpa [#allocation7], 1 }
 0x3c1   :  { %971 = vsyncpa [#allocation5], 1 }
 0x3c2   :  { %972 = vsyncpa [#allocation11], 1 }

</bundles_post_ra>
